<compile_context>
chip_gen: v7x
topology: tpu7x:2x2x1
jax: 0.10.0
libtpu: 0.0.40
codegen_flags: <defaults>
</compile_context>

<pallas_src>
import functools
import math

import jax
import jax.numpy as jnp
from jax.experimental import pallas as pl
from jax.experimental.pallas import tpu as pltpu

LN_EPS = 1e-5  # nn.LayerNorm default


def _patch_merging_kernel(x_ref, w_ref, b_ref, o_ref, *, compute_dtype):
    # x_ref: (th, 2, W2, 2C)  rows of 2x2 patch groups (axis 1 = spatial row
    #                         parity; lanes [0:C] even column, [C:2C] odd column)
    # w_ref: (2, 2C, D)       LN-gamma-folded, parity-permuted reduction weight
    # b_ref: (1, D)           beta @ W (f32)
    # o_ref: (th*W2, D)       output tokens for this tile
    th, _, W2, twoC = x_ref.shape
    T = th * W2

    xb = x_ref[...]
    # Even / odd spatial rows; collapse (th, W2) -> tokens.  Layout-trivial when
    # W2 % 8 == 0; otherwise Mosaic inserts a sublane relayout copy (correct).
    even = xb[:, 0, :, :].reshape(T, twoC).astype(jnp.float32)
    odd = xb[:, 1, :, :].reshape(T, twoC).astype(jnp.float32)

    # Two-pass LayerNorm over the virtual 4C feature axis, all in f32.
    inv_k = 1.0 / float(2 * twoC)
    mean = (jnp.sum(even, axis=-1, keepdims=True)
            + jnp.sum(odd, axis=-1, keepdims=True)) * inv_k
    ce = even - mean
    co = odd - mean
    var = (jnp.sum(ce * ce, axis=-1, keepdims=True)
           + jnp.sum(co * co, axis=-1, keepdims=True)) * inv_k
    inv_std = jax.lax.rsqrt(var + LN_EPS)

    # Two K=2C matmuls: bf16 MXU operands, f32 accumulation.  gamma is already
    # folded into w_ref; beta @ W is added once at the end.
    ne = (ce * inv_std).astype(compute_dtype)
    no = (co * inv_std).astype(compute_dtype)
    acc = jnp.dot(ne, w_ref[0], preferred_element_type=jnp.float32)
    acc = acc + jnp.dot(no, w_ref[1], preferred_element_type=jnp.float32)
    o_ref[...] = (acc + b_ref[...]).astype(o_ref.dtype)


@functools.partial(
    jax.jit,
    static_argnames=("H", "W", "tokens_per_tile", "compute_dtype", "resident_consts"),
)
def patch_merging(x, H, W, gamma, beta, weight, *, tokens_per_tile=1024,
                  compute_dtype=jnp.bfloat16, resident_consts=True):
    """x: (B, L, C) with L == H*W.  Returns (B, L//4, D) matching PatchMerging."""
    B, L, C = x.shape
    assert L == H * W, "Token length doesn't match H*W"
    assert H % 2 == 0 and W % 2 == 0, "H and W must be even"
    K = 4 * C
    assert weight.shape[0] == K and gamma.shape == (K,) and beta.shape == (K,)
    D = weight.shape[1]
    H2, W2 = H // 2, W // 2
    R = B * H2                      # 2x2 row groups; each yields W2 output tokens
    M = R * W2                      # total output tokens
    twoC = 2 * C
    cbytes = jnp.dtype(compute_dtype).itemsize
    xbytes = x.dtype.itemsize

    # Free contiguity-preserving reshape (no HBM gather): (B,H,W,C) -> (R,2,W2,2C).
    x4 = x.reshape(R, 2, W2, twoC)

    # Fold the LayerNorm affine into the reduction weight, then permute its rows
    # into per-row-parity blocks so the kernel does two full-lane matmuls:
    #   block 0 (even spatial row): rows of x0 (even col) then x2 (odd col)
    #   block 1 (odd  spatial row): rows of x1 (even col) then x3 (odd col)
    w32 = weight.astype(jnp.float32)
    wf4 = (gamma.astype(jnp.float32)[:, None] * w32).reshape(4, C, D)
    w_perm = jnp.stack(
        [jnp.concatenate([wf4[0], wf4[2]], axis=0),
         jnp.concatenate([wf4[1], wf4[3]], axis=0)],
        axis=0).astype(compute_dtype)                                 # (2, 2C, D)
    bias = jnp.dot(beta.astype(jnp.float32), w32,
                   precision=jax.lax.Precision.HIGHEST).reshape(1, D)  # f32

    # ---- row-tile (th) selection -------------------------------------------
    u = 8 // math.gcd(W2, 8)              # th multiple of u => th*W2 % 8 == 0
    th = max(u, (max(tokens_per_tile, W2) // W2) // u * u)
    # >= 4 grid steps (2 per v7x TensorCore) whenever the row count permits.
    if R >= 4 * u:
        th = min(th, max(u, (R // 4) // u * u))

    def _vmem_est(th_):
        T_ = th_ * W2
        in_tile = th_ * 2 * W2 * twoC * xbytes            # activation tile
        out_tile = T_ * D * xbytes                        # output tile
        f32_tmp = 2 * T_ * 2 * twoC * 4                   # even/odd + centered (f32)
        lo_tmp = T_ * 2 * twoC * cbytes                   # normalized MXU operands
        acc = T_ * D * 4                                  # f32 accumulator
        w_b = (1 if resident_consts else 2) * 2 * twoC * D * cbytes
        b_b = (1 if resident_consts else 2) * D * 4
        return 2 * (in_tile + out_tile) + f32_tmp + lo_tmp + acc + w_b + b_b

    # Physical VMEM of this chip (64 MiB on v7x, 128 MiB on v5e/v6e); shrink th
    # rather than clamping the limit when the estimate does not fit.
    try:
        phys = int(getattr(pltpu.get_tpu_info(), "vmem_capacity_bytes", 64 << 20))
    except Exception:
        phys = 64 << 20
    cap = max(24 << 20, phys - (16 << 20))
    while th > u and _vmem_est(th) > cap:
        th = max(u, (th // 2) // u * u)
    if th >= R:
        th = R                             # single block covering all row groups
    grid = (pl.cdiv(R, th),)
    vmem_limit = int(min(phys - (8 << 20), max(16 << 20, _vmem_est(th) + (4 << 20))))

    if resident_consts:
        # Grid-invariant weight / bias: stage whole in VMEM once (no double buffer).
        w_spec = pl.BlockSpec(memory_space=pltpu.MemorySpace.VMEM)
        b_spec = pl.BlockSpec(memory_space=pltpu.MemorySpace.VMEM)
    else:
        w_spec = pl.BlockSpec((2, twoC, D), lambda i: (0, 0, 0))
        b_spec = pl.BlockSpec((1, D), lambda i: (0, 0))

    out = pl.pallas_call(
        functools.partial(_patch_merging_kernel, compute_dtype=compute_dtype),
        out_shape=jax.ShapeDtypeStruct((M, D), x.dtype),
        grid=grid,
        in_specs=[
            pl.BlockSpec((th, 2, W2, twoC), lambda i: (i, 0, 0, 0)),
            w_spec,
            b_spec,
        ],
        out_specs=pl.BlockSpec((th * W2, D), lambda i: (i, 0)),
        compiler_params=pltpu.CompilerParams(
            dimension_semantics=("parallel",),
            vmem_limit_bytes=vmem_limit,
        ),
    )(x4, w_perm, bias)

    return out.reshape(B, H2 * W2, D)


# ----------------------------- references ---------------------------------

def _reference_f32(x, H, W, gamma, beta, weight):
    """Exact PyTorch-semantics reference in f32."""
    B, L, C = x.shape
    xv = x.reshape(B, H, W, C).astype(jnp.float32)
    x0 = xv[:, 0::2, 0::2, :]
    x1 = xv[:, 1::2, 0::2, :]
    x2 = xv[:, 0::2, 1::2, :]
    x3 = xv[:, 1::2, 1::2, :]
    xc = jnp.concatenate([x0, x1, x2, x3], axis=-1).reshape(B, -1, 4 * C)
    mean = jnp.mean(xc, axis=-1, keepdims=True)
    var = jnp.mean((xc - mean) ** 2, axis=-1, keepdims=True)
    xn = (xc - mean) * jax.lax.rsqrt(var + LN_EPS)
    xn = xn * gamma.astype(jnp.float32) + beta.astype(jnp.float32)
    return jnp.einsum("blk,kd->bld", xn, weight.astype(jnp.float32),
                      precision=jax.lax.Precision.HIGHEST)


def _reference_matched(x, H, W, gamma, beta, weight, compute_dtype):
    """Reference mirroring the kernel's gamma/beta folding + bf16 MXU operands."""
    B, L, C = x.shape
    xv = x.reshape(B, H, W, C).astype(jnp.float32)
    x0 = xv[:, 0::2, 0::2, :]
    x1 = xv[:, 1::2, 0::2, :]
    x2 = xv[:, 0::2, 1::2, :]
    x3 = xv[:, 1::2, 1::2, :]
    xc = jnp.concatenate([x0, x1, x2, x3], axis=-1).reshape(B, -1, 4 * C)
    mean = jnp.mean(xc, axis=-1, keepdims=True)
    var = jnp.mean((xc - mean) ** 2, axis=-1, keepdims=True)
    xn = (xc - mean) * jax.lax.rsqrt(var + LN_EPS)
    w32 = weight.astype(jnp.float32)
    wf = (gamma.astype(jnp.float32)[:, None] * w32).astype(compute_dtype) \
        .astype(jnp.float32)
    bias = jnp.dot(beta.astype(jnp.float32), w32,
                   precision=jax.lax.Precision.HIGHEST)
    xn_q = xn.astype(compute_dtype).astype(jnp.float32)
    return jnp.einsum("blk,kd->bld", xn_q, wf,
                      precision=jax.lax.Precision.HIGHEST) + bias


# ------------------------------ self-test ----------------------------------

_RESIDENT_OK = True


def _run(x, H, W, gamma, beta, weight, **kw):
    """Call the kernel; fall back to double-buffered consts if the whole-array
    VMEM operand path is unavailable in this JAX build."""
    global _RESIDENT_OK
    if _RESIDENT_OK:
        try:
            return jax.block_until_ready(
                patch_merging(x, H, W, gamma, beta, weight,
                              resident_consts=True, **kw))
        except Exception:
            _RESIDENT_OK = False
    return jax.block_until_ready(
        patch_merging(x, H, W, gamma, beta, weight, resident_consts=False, **kw))


if __name__ == "__main__":
    root = jax.random.PRNGKey(0)

    def run_case(seed_key, B, C, H, W, D, x_dtype, atol_m, rtol_m):
        K = 4 * C
        kx, kw, kg, kb = jax.random.split(seed_key, 4)
        x = jax.random.normal(kx, (B, H * W, C), dtype=jnp.float32).astype(x_dtype)
        gamma = 1.0 + 0.1 * jax.random.normal(kg, (K,), dtype=jnp.float32)
        beta = 0.1 * jax.random.normal(kb, (K,), dtype=jnp.float32)
        weight = 0.1 * jax.random.normal(kw, (K, D), dtype=jnp.float32)

        out = _run(x, H, W, gamma, beta, weight)
        assert out.shape == (B, (H * W) // 4, D), out.shape
        out32 = out.astype(jnp.float32)

        # Tight check: same precision model as the kernel (bf16 operands, f32 acc).
        ref_m = _reference_matched(x, H, W, gamma, beta, weight, jnp.bfloat16)
        err_m = float(jnp.max(jnp.abs(out32 - ref_m)))
        assert jnp.allclose(out32, ref_m, atol=atol_m, rtol=rtol_m), err_m

        # Loose sanity check against the exact f32 PyTorch-semantics reference.
        ref_f = _reference_f32(x, H, W, gamma, beta, weight)
        err_f = float(jnp.max(jnp.abs(out32 - ref_f)))
        assert jnp.allclose(out32, ref_f, atol=6e-2, rtol=6e-2), err_f

    k1, k2, k3 = jax.random.split(root, 3)
    # Primary small case (module-consistent): B=2, C=4, H=W=16 -> L=256, D=8.
    run_case(k1, B=2, C=4, H=16, W=16, D=8, x_dtype=jnp.float32,
             atol_m=5e-3, rtol_m=5e-3)
    # W/2 not a multiple of 8 (exercises the relayout / full-coverage block path).
    run_case(k2, B=2, C=8, H=10, W=10, D=16, x_dtype=jnp.float32,
             atol_m=5e-3, rtol_m=5e-3)
    # bf16 activations (halved HBM read traffic) and a non-default dim_out.
    run_case(k3, B=2, C=8, H=16, W=16, D=24, x_dtype=jnp.bfloat16,
             atol_m=2e-2, rtol_m=2e-2)

    print("KERNEL_OK")
</pallas_src>

<mosaic_0001>
module attributes {stable_mosaic.version = 11 : i64} {
  func.func @_patch_merging_kernel(%arg0: i32, %arg1: memref<4x2x8x8xf32, #tpu.memory_space<vmem>>, %arg2: memref<2x8x8xbf16, #tpu.memory_space<vmem>>, %arg3: memref<1x8xf32, #tpu.memory_space<vmem>>, %arg4: memref<32x8xf32, #tpu.memory_space<vmem>>) attributes {dimension_semantics = [#tpu.dimension_semantics<parallel>], iteration_bounds = array<i64: 4>, scalar_prefetch = 0 : i64, scratch_operands = 0 : i64, tpu.core_type = #tpu.core_type<tc>, window_params = [{transform_indices = @transform_0, window_bounds = array<i64: 4, 2, 8, 8>}, {pipeline_mode = #tpu.pipeline_mode<synchronous>, transform_indices = @transform_1, window_bounds = array<i64: 2, 8, 8>}, {pipeline_mode = #tpu.pipeline_mode<synchronous>, transform_indices = @transform_2, window_bounds = array<i64: 1, 8>}, {transform_indices = @transform_3, window_bounds = array<i64: 32, 8>}]} {
    %c0 = arith.constant 0 : index
    %c0_0 = arith.constant 0 : index
    %c0_1 = arith.constant 0 : index
    %c0_2 = arith.constant 0 : index
    %0 = vector.load %arg1[%c0, %c0_0, %c0_1, %c0_2] : memref<4x2x8x8xf32, #tpu.memory_space<vmem>>, vector<4x2x8x8xf32>
    %1 = vector.extract_strided_slice %0 {offsets = [0, 0, 0, 0], sizes = [4, 1, 8, 8], strides = [1, 1, 1, 1]} : vector<4x2x8x8xf32> to vector<4x1x8x8xf32>
    %2 = vector.shape_cast %1 : vector<4x1x8x8xf32> to vector<4x8x8xf32>
    %3 = vector.shape_cast %2 : vector<4x8x8xf32> to vector<32x8xf32>
    %4 = vector.extract_strided_slice %0 {offsets = [0, 1, 0, 0], sizes = [4, 1, 8, 8], strides = [1, 1, 1, 1]} : vector<4x2x8x8xf32> to vector<4x1x8x8xf32>
    %5 = vector.shape_cast %4 : vector<4x1x8x8xf32> to vector<4x8x8xf32>
    %6 = vector.shape_cast %5 : vector<4x8x8xf32> to vector<32x8xf32>
    %cst = arith.constant dense<0.000000e+00> : vector<32xf32>
    %7 = vector.multi_reduction <add>, %3, %cst [1] : vector<32x8xf32> to vector<32xf32>
    %8 = vector.shape_cast %7 : vector<32xf32> to vector<32x1xf32>
    %cst_3 = arith.constant dense<0.000000e+00> : vector<32xf32>
    %9 = vector.multi_reduction <add>, %6, %cst_3 [1] : vector<32x8xf32> to vector<32xf32>
    %10 = vector.shape_cast %9 : vector<32xf32> to vector<32x1xf32>
    %11 = arith.addf %8, %10 : vector<32x1xf32>
    %cst_4 = arith.constant 6.250000e-02 : f32
    %12 = vector.broadcast %cst_4 : f32 to vector<32x1xf32>
    %13 = arith.mulf %11, %12 : vector<32x1xf32>
    %14 = vector.broadcast %13 : vector<32x1xf32> to vector<32x8xf32>
    %15 = arith.subf %3, %14 : vector<32x8xf32>
    %16 = vector.broadcast %13 : vector<32x1xf32> to vector<32x8xf32>
    %17 = arith.subf %6, %16 : vector<32x8xf32>
    %18 = arith.mulf %15, %15 : vector<32x8xf32>
    %cst_5 = arith.constant dense<0.000000e+00> : vector<32xf32>
    %19 = vector.multi_reduction <add>, %18, %cst_5 [1] : vector<32x8xf32> to vector<32xf32>
    %20 = vector.shape_cast %19 : vector<32xf32> to vector<32x1xf32>
    %21 = arith.mulf %17, %17 : vector<32x8xf32>
    %cst_6 = arith.constant dense<0.000000e+00> : vector<32xf32>
    %22 = vector.multi_reduction <add>, %21, %cst_6 [1] : vector<32x8xf32> to vector<32xf32>
    %23 = vector.shape_cast %22 : vector<32xf32> to vector<32x1xf32>
    %24 = arith.addf %20, %23 : vector<32x1xf32>
    %cst_7 = arith.constant 6.250000e-02 : f32
    %25 = vector.broadcast %cst_7 : f32 to vector<32x1xf32>
    %26 = arith.mulf %24, %25 : vector<32x1xf32>
    %cst_8 = arith.constant 9.99999974E-6 : f32
    %27 = vector.broadcast %cst_8 : f32 to vector<32x1xf32>
    %28 = arith.addf %26, %27 : vector<32x1xf32>
    %29 = math.rsqrt %28 : vector<32x1xf32>
    %30 = vector.broadcast %29 : vector<32x1xf32> to vector<32x8xf32>
    %31 = arith.mulf %15, %30 : vector<32x8xf32>
    %32 = arith.truncf %31 : vector<32x8xf32> to vector<32x8xbf16>
    %33 = vector.broadcast %29 : vector<32x1xf32> to vector<32x8xf32>
    %34 = arith.mulf %17, %33 : vector<32x8xf32>
    %35 = arith.truncf %34 : vector<32x8xf32> to vector<32x8xbf16>
    %c0_9 = arith.constant 0 : index
    %c0_10 = arith.constant 0 : index
    %c0_11 = arith.constant 0 : index
    %36 = vector.load %arg2[%c0_9, %c0_10, %c0_11] : memref<2x8x8xbf16, #tpu.memory_space<vmem>>, vector<1x8x8xbf16>
    %37 = vector.shape_cast %36 : vector<1x8x8xbf16> to vector<8x8xbf16>
    %cst_12 = arith.constant dense<0.000000e+00> : vector<32x8xf32>
    %38 = tpu.matmul %32, %37, %cst_12 {dimension_numbers = #tpu.dot_dimension_numbers<[1], [0], [0], [1], [0, 0, 1, 1], [], []>} : vector<32x8xbf16>, vector<8x8xbf16>, vector<32x8xf32> -> vector<32x8xf32>
    %c1 = arith.constant 1 : index
    %c0_13 = arith.constant 0 : index
    %c0_14 = arith.constant 0 : index
    %39 = vector.load %arg2[%c1, %c0_13, %c0_14] : memref<2x8x8xbf16, #tpu.memory_space<vmem>>, vector<1x8x8xbf16>
    %40 = vector.shape_cast %39 : vector<1x8x8xbf16> to vector<8x8xbf16>
    %cst_15 = arith.constant dense<0.000000e+00> : vector<32x8xf32>
    %41 = tpu.matmul %35, %40, %cst_15 {dimension_numbers = #tpu.dot_dimension_numbers<[1], [0], [0], [1], [0, 0, 1, 1], [], []>} : vector<32x8xbf16>, vector<8x8xbf16>, vector<32x8xf32> -> vector<32x8xf32>
    %42 = arith.addf %38, %41 : vector<32x8xf32>
    %c0_16 = arith.constant 0 : index
    %c0_17 = arith.constant 0 : index
    %43 = vector.load %arg3[%c0_16, %c0_17] : memref<1x8xf32, #tpu.memory_space<vmem>>, vector<1x8xf32>
    %44 = vector.broadcast %43 : vector<1x8xf32> to vector<32x8xf32>
    %45 = arith.addf %42, %44 : vector<32x8xf32>
    %c0_18 = arith.constant 0 : index
    %c0_19 = arith.constant 0 : index
    %46 = vector.load %arg4[%c0_18, %c0_19] : memref<32x8xf32, #tpu.memory_space<vmem>>, vector<32x8xf32>
    tpu.vector_store %arg4[%c0_18, %c0_19], %45 {strides = array<i32>} : memref<32x8xf32, #tpu.memory_space<vmem>>, vector<32x8xf32>,
    return
  }
  func.func @transform_0(%arg0: i32) -> (i32, i32, i32, i32) {
    %c0_i32 = arith.constant 0 : i32
    %c0_i32_0 = arith.constant 0 : i32
    %c0_i32_1 = arith.constant 0 : i32
    %c0_i32_2 = arith.constant 0 : i32
    return %arg0, %c0_i32, %c0_i32_0, %c0_i32_1 : i32, i32, i32, i32
  }
  func.func @transform_1(%arg0: i32) -> (i32, i32, i32) {
    %c0_i32 = arith.constant 0 : i32
    %c0_i32_0 = arith.constant 0 : i32
    %c0_i32_1 = arith.constant 0 : i32
    %c0_i32_2 = arith.constant 0 : i32
    return %c0_i32, %c0_i32_0, %c0_i32_1 : i32, i32, i32
  }
  func.func @transform_2(%arg0: i32) -> (i32, i32) {
    %c0_i32 = arith.constant 0 : i32
    %c0_i32_0 = arith.constant 0 : i32
    %c0_i32_1 = arith.constant 0 : i32
    return %c0_i32, %c0_i32_0 : i32, i32
  }
  func.func @transform_3(%arg0: i32) -> (i32, i32) {
    %c0_i32 = arith.constant 0 : i32
    %c0_i32_0 = arith.constant 0 : i32
    return %arg0, %c0_i32 : i32, i32
  }
}

module attributes {stable_mosaic.version = 11 : i64} {
  func.func @_patch_merging_kernel(%arg0: i32, %arg1: memref<4x2x8x8xf32, #tpu.memory_space<vmem>>, %arg2: memref<2x8x8xbf16, #tpu.memory_space<vmem>>, %arg3: memref<1x8xf32, #tpu.memory_space<vmem>>, %arg4: memref<32x8xf32, #tpu.memory_space<vmem>>) attributes {dimension_semantics = [#tpu.dimension_semantics<parallel>], iteration_bounds = array<i64: 4>, scalar_prefetch = 0 : i64, scratch_operands = 0 : i64, tpu.core_type = #tpu.core_type<tc>, window_params = [{transform_indices = @transform_0, window_bounds = array<i64: 4, 2, 8, 8>}, {pipeline_mode = #tpu.pipeline_mode<synchronous>, transform_indices = @transform_1, window_bounds = array<i64: 2, 8, 8>}, {pipeline_mode = #tpu.pipeline_mode<synchronous>, transform_indices = @transform_2, window_bounds = array<i64: 1, 8>}, {transform_indices = @transform_3, window_bounds = array<i64: 32, 8>}]} {
    %c0 = arith.constant 0 : index
    %c0_0 = arith.constant 0 : index
    %c0_1 = arith.constant 0 : index
    %c0_2 = arith.constant 0 : index
    %0 = vector.load %arg1[%c0, %c0_0, %c0_1, %c0_2] : memref<4x2x8x8xf32, #tpu.memory_space<vmem>>, vector<4x2x8x8xf32>
    %1 = vector.extract_strided_slice %0 {offsets = [0, 0, 0, 0], sizes = [4, 1, 8, 8], strides = [1, 1, 1, 1]} : vector<4x2x8x8xf32> to vector<4x1x8x8xf32>
    %2 = vector.shape_cast %1 : vector<4x1x8x8xf32> to vector<4x8x8xf32>
    %3 = vector.shape_cast %2 : vector<4x8x8xf32> to vector<32x8xf32>
    %4 = vector.extract_strided_slice %0 {offsets = [0, 1, 0, 0], sizes = [4, 1, 8, 8], strides = [1, 1, 1, 1]} : vector<4x2x8x8xf32> to vector<4x1x8x8xf32>
    %5 = vector.shape_cast %4 : vector<4x1x8x8xf32> to vector<4x8x8xf32>
    %6 = vector.shape_cast %5 : vector<4x8x8xf32> to vector<32x8xf32>
    %cst = arith.constant dense<0.000000e+00> : vector<32xf32>
    %7 = vector.multi_reduction <add>, %3, %cst [1] : vector<32x8xf32> to vector<32xf32>
    %8 = vector.shape_cast %7 : vector<32xf32> to vector<32x1xf32>
    %cst_3 = arith.constant dense<0.000000e+00> : vector<32xf32>
    %9 = vector.multi_reduction <add>, %6, %cst_3 [1] : vector<32x8xf32> to vector<32xf32>
    %10 = vector.shape_cast %9 : vector<32xf32> to vector<32x1xf32>
    %11 = arith.addf %8, %10 : vector<32x1xf32>
    %cst_4 = arith.constant 6.250000e-02 : f32
    %12 = vector.broadcast %cst_4 : f32 to vector<32x1xf32>
    %13 = arith.mulf %11, %12 : vector<32x1xf32>
    %14 = vector.broadcast %13 : vector<32x1xf32> to vector<32x8xf32>
    %15 = arith.subf %3, %14 : vector<32x8xf32>
    %16 = vector.broadcast %13 : vector<32x1xf32> to vector<32x8xf32>
    %17 = arith.subf %6, %16 : vector<32x8xf32>
    %18 = arith.mulf %15, %15 : vector<32x8xf32>
    %cst_5 = arith.constant dense<0.000000e+00> : vector<32xf32>
    %19 = vector.multi_reduction <add>, %18, %cst_5 [1] : vector<32x8xf32> to vector<32xf32>
    %20 = vector.shape_cast %19 : vector<32xf32> to vector<32x1xf32>
    %21 = arith.mulf %17, %17 : vector<32x8xf32>
    %cst_6 = arith.constant dense<0.000000e+00> : vector<32xf32>
    %22 = vector.multi_reduction <add>, %21, %cst_6 [1] : vector<32x8xf32> to vector<32xf32>
    %23 = vector.shape_cast %22 : vector<32xf32> to vector<32x1xf32>
    %24 = arith.addf %20, %23 : vector<32x1xf32>
    %cst_7 = arith.constant 6.250000e-02 : f32
    %25 = vector.broadcast %cst_7 : f32 to vector<32x1xf32>
    %26 = arith.mulf %24, %25 : vector<32x1xf32>
    %cst_8 = arith.constant 9.99999974E-6 : f32
    %27 = vector.broadcast %cst_8 : f32 to vector<32x1xf32>
    %28 = arith.addf %26, %27 : vector<32x1xf32>
    %29 = math.rsqrt %28 : vector<32x1xf32>
    %30 = vector.broadcast %29 : vector<32x1xf32> to vector<32x8xf32>
    %31 = arith.mulf %15, %30 : vector<32x8xf32>
    %32 = arith.truncf %31 : vector<32x8xf32> to vector<32x8xbf16>
    %33 = vector.broadcast %29 : vector<32x1xf32> to vector<32x8xf32>
    %34 = arith.mulf %17, %33 : vector<32x8xf32>
    %35 = arith.truncf %34 : vector<32x8xf32> to vector<32x8xbf16>
    %c0_9 = arith.constant 0 : index
    %c0_10 = arith.constant 0 : index
    %c0_11 = arith.constant 0 : index
    %36 = vector.load %arg2[%c0_9, %c0_10, %c0_11] : memref<2x8x8xbf16, #tpu.memory_space<vmem>>, vector<1x8x8xbf16>
    %37 = vector.shape_cast %36 : vector<1x8x8xbf16> to vector<8x8xbf16>
    %cst_12 = arith.constant dense<0.000000e+00> : vector<32x8xf32>
    %38 = tpu.matmul %32, %37, %cst_12 {dimension_numbers = #tpu.dot_dimension_numbers<[1], [0], [0], [1], [0, 0, 1, 1], [], []>} : vector<32x8xbf16>, vector<8x8xbf16>, vector<32x8xf32> -> vector<32x8xf32>
    %c1 = arith.constant 1 : index
    %c0_13 = arith.constant 0 : index
    %c0_14 = arith.constant 0 : index
    %39 = vector.load %arg2[%c1, %c0_13, %c0_14] : memref<2x8x8xbf16, #tpu.memory_space<vmem>>, vector<1x8x8xbf16>
    %40 = vector.shape_cast %39 : vector<1x8x8xbf16> to vector<8x8xbf16>
    %cst_15 = arith.constant dense<0.000000e+00> : vector<32x8xf32>
    %41 = tpu.matmul %35, %40, %cst_15 {dimension_numbers = #tpu.dot_dimension_numbers<[1], [0], [0], [1], [0, 0, 1, 1], [], []>} : vector<32x8xbf16>, vector<8x8xbf16>, vector<32x8xf32> -> vector<32x8xf32>
    %42 = arith.addf %38, %41 : vector<32x8xf32>
    %c0_16 = arith.constant 0 : index
    %c0_17 = arith.constant 0 : index
    %43 = vector.load %arg3[%c0_16, %c0_17] : memref<1x8xf32, #tpu.memory_space<vmem>>, vector<1x8xf32>
    %44 = vector.broadcast %43 : vector<1x8xf32> to vector<32x8xf32>
    %45 = arith.addf %42, %44 : vector<32x8xf32>
    %c0_18 = arith.constant 0 : index
    %c0_19 = arith.constant 0 : index
    %46 = vector.load %arg4[%c0_18, %c0_19] : memref<32x8xf32, #tpu.memory_space<vmem>>, vector<32x8xf32>
    tpu.vector_store %arg4[%c0_18, %c0_19], %45 {strides = array<i32>} : memref<32x8xf32, #tpu.memory_space<vmem>>, vector<32x8xf32>,
    return
  }
  func.func @transform_0(%arg0: i32) -> (i32, i32, i32, i32) {
    %c0_i32 = arith.constant 0 : i32
    %c0_i32_0 = arith.constant 0 : i32
    %c0_i32_1 = arith.constant 0 : i32
    %c0_i32_2 = arith.constant 0 : i32
    return %arg0, %c0_i32, %c0_i32_0, %c0_i32_1 : i32, i32, i32, i32
  }
  func.func @transform_1(%arg0: i32) -> (i32, i32, i32) {
    %c0_i32 = arith.constant 0 : i32
    %c0_i32_0 = arith.constant 0 : i32
    %c0_i32_1 = arith.constant 0 : i32
    %c0_i32_2 = arith.constant 0 : i32
    return %c0_i32, %c0_i32_0, %c0_i32_1 : i32, i32, i32
  }
  func.func @transform_2(%arg0: i32) -> (i32, i32) {
    %c0_i32 = arith.constant 0 : i32
    %c0_i32_0 = arith.constant 0 : i32
    %c0_i32_1 = arith.constant 0 : i32
    return %c0_i32, %c0_i32_0 : i32, i32
  }
  func.func @transform_3(%arg0: i32) -> (i32, i32) {
    %c0_i32 = arith.constant 0 : i32
    %c0_i32_0 = arith.constant 0 : i32
    return %arg0, %c0_i32 : i32, i32
  }
}

</mosaic_0001>

<bundles_post_ra>
// kernel: patch_merging.1
= control target key start
LH: loop header
LB: loop body
LE: loop exit
PB: predicated region body
PF: predicated region fallthrough
CT: control target
= control target key end

     0   :  { %s565_s12 = smov 0   ;;  %s649_s0 = inlined_call_operand.vmem [shape: f32[16,2,8,8], index: 0, kind: input, shape index: {}]   ;;  %s650_s1 = inlined_call_operand.vmem [shape: bf16[2,8,8], index: 1, kind: input, shape index: {}]   ;;  %s651_s2 = inlined_call_operand.vmem [shape: f32[1,8], index: 2, kind: input, shape index: {}]   ;;  %s652_s3 = inlined_call_operand.vmem [shape: f32[128,8], index: 3, kind: output, shape index: {}]  }
   0x1 LB: > { %s478_s13 = sadd.s32 4294967295, %s543_s12   ;;  %p482_p0 = scmp.ge.s32.totalorder %s543_s12, 1  ;;  %s543_s12 = sphi %s565_s12, %s13_s12  }
   0x2   : > { %p139_p1 = scmp.lt.s32.totalorder %s543_s12, 5 }
   0x4   : > { %p140_p2 = pnand %p482_p0, %p139_p1 }
   0x5   : > { %s483_s14 = sshll.u32 (!%p140_p2), %s478_s13, 2  ;;  %vm186_vm0 = vcmask (!%p140_p2), 64512   ;;  %v488_v56 = vld [vmem:[%s650_s1 + $0x4] sm:$0xf] (!%p140_p2)  ;;  %vm296_vm1 = vcmask (!%p140_p2), 1043456  }
   0x6   : > { %143 = sbr.rel (%p140_p2) target bundleno = 569 (0x239), region = 32  ;;  %p165_p3 = scmp.lt.s32.totalorder (!%p140_p2), %s483_s14, 15  ;;  %v287_v57 = vld [vmem:[%s650_s1] sm:$0xf] (!%p140_p2)  ;;  %519 = vmatprep.subr.msk.bf16.mxu1 (!%p140_p2), %vm296_vm1, %v488_v56  ;;  %v298_v58 = vsel (!%p140_p2), %vm296_vm1, %v488_v56, 0 }
   0x7   : > { %520 = vmatprep.subr.msk.bf16.mxu0 (!%p140_p2), %vm296_vm1, %v287_v57  ;;  %v356_v59 = vsel (!%p140_p2), %vm296_vm1, %v287_v57, 0  ;;  %504 = vmatpush3.bf16.msra.mxu1 (!%p140_p2), %v298_v58 }
   0x8   : > { %510 = vmatpush3.bf16.msra.mxu0 (!%p140_p2), %v356_v59 }
   0xd   : > { %s654_s14 = smov (!%p165_p3, %s483_s14), 15 }
   0xe   : > { %s496_s15 = sshll.u32 %s654_s14, 4  ;;  %s487_s23 = sshll.u32 %s654_s14, 3 }
   0xf   : > { %s169_s18 = scalar_lea.vmem %s649_s0, %s496_s15  ;;  %s175_s28 = scalar_lea.vmem %s652_s3, %s487_s23 }
  0x10   : > { %v179_v0 = vld [vmem:[%s169_s18 + $0x8] sm:$0xff]  ;;  %v178_v1 = vld [vmem:[%s169_s18] sm:$0xff]  ;;  %v181_v2 = vld [vmem:[%s169_s18 + $0x18] sm:$0xff] }
  0x11   : > { %v199_v3 = vsel %vm186_vm0, %v179_v0, 0.0  ;;  %v187_v4 = vsel %vm186_vm0, %v178_v1, 0.0  ;;  %v180_v5 = vld [vmem:[%s169_s18 + $0x10] sm:$0xff]  ;;  %v202_v6 = vsel %vm186_vm0, %v181_v2, 0.0  ;;  %v182_v9 = vld [vmem:[%s169_s18 + $0x20] sm:$0xff]  ;;  %v185_v12 = vld [vmem:[%s169_s18 + $0x38] sm:$0xff] }
  0x12   : > { %200 = vadd.xlane.f32.xlu1 %v199_v3  ;;  %188 = vadd.xlane.f32.xlu0 %v187_v4  ;;  %v190_v7 = vsel %vm186_vm0, %v180_v5, 0.0  ;;  %v184_v8 = vld [vmem:[%s169_s18 + $0x30] sm:$0xff]  ;;  %v193_v11 = vsel %vm186_vm0, %v182_v9, 0.0  ;;  %v183_v13 = vld [vmem:[%s169_s18 + $0x28] sm:$0xff]  ;;  %v208_v14 = vsel %vm186_vm0, %v185_v12, 0.0 }
  0x13   : > { %v196_v10 = vsel %vm186_vm0, %v184_v8, 0.0  ;;  %v205_v15 = vsel %vm186_vm0, %v183_v13, 0.0 }
  0x16   : > { %203 = vadd.xlane.f32.xlu1 %v202_v6  ;;  %191 = vadd.xlane.f32.xlu0 %v190_v7 }
  0x1a   : > { %197 = vadd.xlane.f32.xlu1 %v196_v10  ;;  %194 = vadd.xlane.f32.xlu0 %v193_v11 }
  0x1e   : > { %209 = vadd.xlane.f32.xlu1 %v208_v14  ;;  %206 = vadd.xlane.f32.xlu0 %v205_v15 }
  0x9f   : > { %v201_v16 = vpop.xlane.xlu1 %200  ;;  %v189_v17 = vpop.xlane.xlu0 %188 }
  0xa0   : > { %v211_v18 = vadd.f32 %v201_v16, %v189_v17 }
  0xa2   : > { %v215_v19 = vmul.f32 0.0625, %v211_v18 }
  0xa3   : > { %v204_v20 = vpop.xlane.xlu1 %203  ;;  %v192_v21 = vpop.xlane.xlu0 %191 }
  0xa4   : > { %v587_v22 = vsub.f32 %v178_v1, %v215_v19  ;;  %v589_v23 = vsub.f32 %v179_v0, %v215_v19  ;;  %v212_v24 = vadd.f32 %v204_v20, %v192_v21 }
  0xa6   : > { %v216_v25 = vmul.f32 0.0625, %v212_v24  ;;  %v227_v26 = vmul.f32 %v587_v22, %v587_v22  ;;  %v243_v32 = vmul.f32 %v589_v23, %v589_v23 }
  0xa7   : > { %v198_v27 = vpop.xlane.xlu1 %197  ;;  %v195_v28 = vpop.xlane.xlu0 %194 }
  0xa8   : > { %v593_v29 = vsub.f32 %v180_v5, %v216_v25  ;;  %v595_v30 = vsub.f32 %v181_v2, %v216_v25  ;;  %v231_v31 = vsel %vm186_vm0, %v227_v26, 0.0  ;;  %v247_v39 = vsel %vm186_vm0, %v243_v32, 0.0 }
  0xa9   : > { %232 = vadd.xlane.f32.xlu0 %v231_v31 }
  0xaa   : > { %v228_v33 = vmul.f32 %v593_v29, %v593_v29  ;;  %v244_v36 = vmul.f32 %v595_v30, %v595_v30 }
  0xab   : > { %v210_v34 = vpop.xlane.xlu1 %209  ;;  %v207_v35 = vpop.xlane.xlu0 %206 }
  0xac   : > { %v214_v37 = vadd.f32 %v210_v34, %v198_v27  ;;  %v213_v38 = vadd.f32 %v207_v35, %v195_v28  ;;  %v234_v40 = vsel %vm186_vm0, %v228_v33, 0.0  ;;  %v250_v43 = vsel %vm186_vm0, %v244_v36, 0.0  ;;  %v493_v34 = vld [vmem:[%s651_s2] ss:$0 sm:$0xff] }
  0xad   : > { %248 = vadd.xlane.f32.xlu0 %v247_v39  ;;  %235 = vadd.xlane.f32.xlu1 %v234_v40 }
  0xae   : > { %v218_v41 = vmul.f32 0.0625, %v214_v37  ;;  %v217_v42 = vmul.f32 0.0625, %v213_v38 }
  0xb0   : > { %v607_v44 = vsub.f32 %v184_v8, %v218_v41  ;;  %v226_v45 = vsub.f32 %v185_v12, %v218_v41  ;;  %v609_v46 = vsub.f32 %v182_v9, %v217_v42  ;;  %v225_v47 = vsub.f32 %v183_v13, %v217_v42 }
  0xb1   : > { %251 = vadd.xlane.f32.xlu1 %v250_v43 }
  0xb2   : > { %v230_v48 = vmul.f32 %v607_v44, %v607_v44  ;;  %v229_v49 = vmul.f32 %v609_v46, %v609_v46  ;;  %v246_v52 = vmul.f32 %v226_v45, %v226_v45  ;;  %v245_v53 = vmul.f32 %v225_v47, %v225_v47 }
  0xb4   : > { %v240_v50 = vsel %vm186_vm0, %v230_v48, 0.0  ;;  %v237_v51 = vsel %vm186_vm0, %v229_v49, 0.0  ;;  %v256_v54 = vsel %vm186_vm0, %v246_v52, 0.0  ;;  %v253_v55 = vsel %vm186_vm0, %v245_v53, 0.0 }
  0xb5   : > { %241 = vadd.xlane.f32.xlu1 %v240_v50  ;;  %238 = vadd.xlane.f32.xlu0 %v237_v51 }
  0xb9   : > { %257 = vadd.xlane.f32.xlu1 %v256_v54  ;;  %254 = vadd.xlane.f32.xlu0 %v253_v55 }
 0x136   : > { %v233_v60 = vpop.xlane.xlu0 %232 }
 0x13a   : > { %v236_v61 = vpop.xlane.xlu1 %235  ;;  %v249_v62 = vpop.xlane.xlu0 %248 }
 0x13b   : > { %v259_v63 = vadd.f32 %v249_v62, %v233_v60 }
 0x13d   : > { %v263_v0 = vmul.f32 0.0625, %v259_v63 }
 0x13e   : > { %v252_v1 = vpop.xlane.xlu1 %251 }
 0x13f   : > { %v267_v2 = vadd.f32 1e-05, %v263_v0  ;;  %v260_v3 = vadd.f32 %v252_v1, %v236_v61 }
 0x141   : > { %v264_v4 = vmul.f32 0.0625, %v260_v3  ;;  %529 = vrsqrt.f32 %v267_v2 }
 0x142   : > { %v242_v5 = vpop.xlane.xlu1 %241  ;;  %v239_v6 = vpop.xlane.xlu0 %238 }
 0x143   : > { %v268_v7 = vadd.f32 1e-05, %v264_v4 }
 0x145   : > { %531 = vrsqrt.f32 %v268_v7 }
 0x146   : > { %v258_v8 = vpop.xlane.xlu1 %257  ;;  %v255_v9 = vpop.xlane.xlu0 %254 }
 0x147   : > { %v262_v10 = vadd.f32 %v258_v8, %v242_v5  ;;  %v261_v11 = vadd.f32 %v255_v9, %v239_v6 }
 0x149   : > { %v266_v12 = vmul.f32 0.0625, %v262_v10  ;;  %v265_v13 = vmul.f32 0.0625, %v261_v11 }
 0x14b   : > { %v270_v14 = vadd.f32 1e-05, %v266_v12  ;;  %v269_v15 = vadd.f32 1e-05, %v265_v13  ;;  %v530_v16 = vpop.eup %529 }
 0x14c   : > { %v281_v18 = vmul.f32 %v530_v16, %v589_v23  ;;  %v275_v20 = vmul.f32 %v530_v16, %v587_v22 }
 0x14d   : > { %533 = vrsqrt.f32 %v270_v14 }
 0x14e   : > { %535 = vrsqrt.f32 %v269_v15 }
 0x14f   : > { %v532_v17 = vpop.eup %531 }
 0x150   : > { %v282_v19 = vmul.f32 %v532_v17, %v595_v30  ;;  %v276_v21 = vmul.f32 %v532_v17, %v593_v29 }
 0x152   : > { %v285_v24 = vpack.c.bf16 %v282_v19, %v281_v18  ;;  %v279_v25 = vpack.c.bf16 %v276_v21, %v275_v20 }
 0x154   : > { %505 = vmatprep.mubr.msk.bf16.mxu1 %vm186_vm0, %v285_v24  ;;  %511 = vmatprep.mubr.msk.bf16.mxu0 %vm186_vm0, %v279_v25 }
 0x157   : > { %v534_v26 = vpop.eup %533 }
 0x158   : > { %v536_v27 = vpop.eup %535  ;;  %v284_v28 = vmul.f32 %v534_v26, %v226_v45  ;;  %v278_v31 = vmul.f32 %v534_v26, %v607_v44 }
 0x159   : > { %v283_v32 = vmul.f32 %v536_v27, %v225_v47  ;;  %v277_v23 = vmul.f32 %v536_v27, %v609_v46 }
 0x15b   : > { %v286_v30 = vpack.c.bf16 %v284_v28, %v283_v32  ;;  %v280_v33 = vpack.c.bf16 %v278_v31, %v277_v23 }
 0x15d   : > { %506 = vmatmul.mubr.msk.bf16.vlgmr.msra.gmra.mrb[0].mxu1 %vm186_vm0, %v286_v30  ;;  %512 = vmatmul.mubr.msk.bf16.vlgmr.msra.gmra.mrb[0].mxu0 %vm186_vm0, %v280_v33 }
 0x230   : > { %v507_v22 = vpop.f32.mrb[0].mxu1  ;;  %v513_v29 = vpop.f32.mrb[0].mxu0 }
 0x231   : > { %v401_v35 = vadd.f32 %v513_v29, %v507_v22  ;;  %v334_v36 = vpop.f32.mrb[1].mxu1  ;;  %v392_v37 = vpop.f32.mrb[1].mxu0 }
 0x232   : > { %v393_v38 = vadd.f32 %v392_v37, %v334_v36  ;;  %v508_v39 = vpop.f32.mrb[2].mxu1  ;;  %v514_v40 = vpop.f32.mrb[2].mxu0 }
 0x233   : > { %v416_v41 = vadd.f32 %v493_v34, %v401_v35  ;;  %v404_v42 = vadd.f32 %v514_v40, %v508_v39  ;;  %v337_v43 = vpop.f32.mrb[3].mxu1  ;;  %v395_v44 = vpop.f32.mrb[3].mxu0 }
 0x234   : > { %v414_v45 = vadd.f32 %v493_v34, %v393_v38  ;;  %v396_v46 = vadd.f32 %v395_v44, %v337_v43 }
 0x235   : > { %420 = vst.msk [vmem:[%s175_s28 + $0x10] sm:$0xff] %vm186_vm0, %v416_v41  ;;  %v417_v47 = vadd.f32 %v493_v34, %v404_v42 }
 0x236   : > { %418 = vst.msk [vmem:[%s175_s28] sm:$0xff] %vm186_vm0, %v414_v45  ;;  %v415_v48 = vadd.f32 %v493_v34, %v396_v46 }
 0x237   : > { %421 = vst.msk [vmem:[%s175_s28 + $0x18] sm:$0xff] %vm186_vm0, %v417_v47 }
 0x238   : > { %419 = vst.msk [vmem:[%s175_s28 + $0x8] sm:$0xff] %vm186_vm0, %v415_v48 }
 0x239 PF: > { %s13_s12 = sadd.s32 1, %s543_s12  }
 0x23a   : > { %p10_p4 = scmp.ge.s32.totalorder %s13_s12, 6  }
 0x23c   :  { %12 = sbr.rel (!%p10_p4) target bundleno = 1 (0x1), region = 63 }

// kernel: patch_merging.1
= control target key start
LH: loop header
LB: loop body
LE: loop exit
PB: predicated region body
PF: predicated region fallthrough
CT: control target
= control target key end

     0   :  { %s565_s12 = smov 0   ;;  %s649_s0 = inlined_call_operand.vmem [shape: f32[16,2,8,8], index: 0, kind: input, shape index: {}]   ;;  %s650_s1 = inlined_call_operand.vmem [shape: bf16[2,8,8], index: 1, kind: input, shape index: {}]   ;;  %s651_s2 = inlined_call_operand.vmem [shape: f32[1,8], index: 2, kind: input, shape index: {}]   ;;  %s652_s3 = inlined_call_operand.vmem [shape: f32[128,8], index: 3, kind: output, shape index: {}]  }
   0x1 LB: > { %s478_s13 = sadd.s32 4294967295, %s543_s12   ;;  %p482_p0 = scmp.ge.s32.totalorder %s543_s12, 1  ;;  %s543_s12 = sphi %s565_s12, %s13_s12  }
   0x2   : > { %p139_p1 = scmp.lt.s32.totalorder %s543_s12, 5 }
   0x4   : > { %p140_p2 = pnand %p482_p0, %p139_p1 }
   0x5   : > { %s483_s14 = sshll.u32 (!%p140_p2), %s478_s13, 2  ;;  %vm186_vm0 = vcmask (!%p140_p2), 64512   ;;  %v488_v56 = vld [vmem:[%s650_s1 + $0x4] sm:$0xf] (!%p140_p2)  ;;  %vm296_vm1 = vcmask (!%p140_p2), 1043456  }
   0x6   : > { %143 = sbr.rel (%p140_p2) target bundleno = 569 (0x239), region = 32  ;;  %p165_p3 = scmp.lt.s32.totalorder (!%p140_p2), %s483_s14, 15  ;;  %v287_v57 = vld [vmem:[%s650_s1] sm:$0xf] (!%p140_p2)  ;;  %519 = vmatprep.subr.msk.bf16.mxu1 (!%p140_p2), %vm296_vm1, %v488_v56  ;;  %v298_v58 = vsel (!%p140_p2), %vm296_vm1, %v488_v56, 0 }
   0x7   : > { %520 = vmatprep.subr.msk.bf16.mxu0 (!%p140_p2), %vm296_vm1, %v287_v57  ;;  %v356_v59 = vsel (!%p140_p2), %vm296_vm1, %v287_v57, 0  ;;  %504 = vmatpush3.bf16.msra.mxu1 (!%p140_p2), %v298_v58 }
   0x8   : > { %510 = vmatpush3.bf16.msra.mxu0 (!%p140_p2), %v356_v59 }
   0xd   : > { %s654_s14 = smov (!%p165_p3, %s483_s14), 15 }
   0xe   : > { %s496_s15 = sshll.u32 %s654_s14, 4  ;;  %s487_s23 = sshll.u32 %s654_s14, 3 }
   0xf   : > { %s169_s18 = scalar_lea.vmem %s649_s0, %s496_s15  ;;  %s175_s28 = scalar_lea.vmem %s652_s3, %s487_s23 }
  0x10   : > { %v179_v0 = vld [vmem:[%s169_s18 + $0x8] sm:$0xff]  ;;  %v178_v1 = vld [vmem:[%s169_s18] sm:$0xff]  ;;  %v181_v2 = vld [vmem:[%s169_s18 + $0x18] sm:$0xff] }
  0x11   : > { %v199_v3 = vsel %vm186_vm0, %v179_v0, 0.0  ;;  %v187_v4 = vsel %vm186_vm0, %v178_v1, 0.0  ;;  %v180_v5 = vld [vmem:[%s169_s18 + $0x10] sm:$0xff]  ;;  %v202_v6 = vsel %vm186_vm0, %v181_v2, 0.0  ;;  %v182_v9 = vld [vmem:[%s169_s18 + $0x20] sm:$0xff]  ;;  %v185_v12 = vld [vmem:[%s169_s18 + $0x38] sm:$0xff] }
  0x12   : > { %200 = vadd.xlane.f32.xlu1 %v199_v3  ;;  %188 = vadd.xlane.f32.xlu0 %v187_v4  ;;  %v190_v7 = vsel %vm186_vm0, %v180_v5, 0.0  ;;  %v184_v8 = vld [vmem:[%s169_s18 + $0x30] sm:$0xff]  ;;  %v193_v11 = vsel %vm186_vm0, %v182_v9, 0.0  ;;  %v183_v13 = vld [vmem:[%s169_s18 + $0x28] sm:$0xff]  ;;  %v208_v14 = vsel %vm186_vm0, %v185_v12, 0.0 }
  0x13   : > { %v196_v10 = vsel %vm186_vm0, %v184_v8, 0.0  ;;  %v205_v15 = vsel %vm186_vm0, %v183_v13, 0.0 }
  0x16   : > { %203 = vadd.xlane.f32.xlu1 %v202_v6  ;;  %191 = vadd.xlane.f32.xlu0 %v190_v7 }
  0x1a   : > { %197 = vadd.xlane.f32.xlu1 %v196_v10  ;;  %194 = vadd.xlane.f32.xlu0 %v193_v11 }
  0x1e   : > { %209 = vadd.xlane.f32.xlu1 %v208_v14  ;;  %206 = vadd.xlane.f32.xlu0 %v205_v15 }
  0x9f   : > { %v201_v16 = vpop.xlane.xlu1 %200  ;;  %v189_v17 = vpop.xlane.xlu0 %188 }
  0xa0   : > { %v211_v18 = vadd.f32 %v201_v16, %v189_v17 }
  0xa2   : > { %v215_v19 = vmul.f32 0.0625, %v211_v18 }
  0xa3   : > { %v204_v20 = vpop.xlane.xlu1 %203  ;;  %v192_v21 = vpop.xlane.xlu0 %191 }
  0xa4   : > { %v587_v22 = vsub.f32 %v178_v1, %v215_v19  ;;  %v589_v23 = vsub.f32 %v179_v0, %v215_v19  ;;  %v212_v24 = vadd.f32 %v204_v20, %v192_v21 }
  0xa6   : > { %v216_v25 = vmul.f32 0.0625, %v212_v24  ;;  %v227_v26 = vmul.f32 %v587_v22, %v587_v22  ;;  %v243_v32 = vmul.f32 %v589_v23, %v589_v23 }
  0xa7   : > { %v198_v27 = vpop.xlane.xlu1 %197  ;;  %v195_v28 = vpop.xlane.xlu0 %194 }
  0xa8   : > { %v593_v29 = vsub.f32 %v180_v5, %v216_v25  ;;  %v595_v30 = vsub.f32 %v181_v2, %v216_v25  ;;  %v231_v31 = vsel %vm186_vm0, %v227_v26, 0.0  ;;  %v247_v39 = vsel %vm186_vm0, %v243_v32, 0.0 }
  0xa9   : > { %232 = vadd.xlane.f32.xlu0 %v231_v31 }
  0xaa   : > { %v228_v33 = vmul.f32 %v593_v29, %v593_v29  ;;  %v244_v36 = vmul.f32 %v595_v30, %v595_v30 }
  0xab   : > { %v210_v34 = vpop.xlane.xlu1 %209  ;;  %v207_v35 = vpop.xlane.xlu0 %206 }
  0xac   : > { %v214_v37 = vadd.f32 %v210_v34, %v198_v27  ;;  %v213_v38 = vadd.f32 %v207_v35, %v195_v28  ;;  %v234_v40 = vsel %vm186_vm0, %v228_v33, 0.0  ;;  %v250_v43 = vsel %vm186_vm0, %v244_v36, 0.0  ;;  %v493_v34 = vld [vmem:[%s651_s2] ss:$0 sm:$0xff] }
  0xad   : > { %248 = vadd.xlane.f32.xlu0 %v247_v39  ;;  %235 = vadd.xlane.f32.xlu1 %v234_v40 }
  0xae   : > { %v218_v41 = vmul.f32 0.0625, %v214_v37  ;;  %v217_v42 = vmul.f32 0.0625, %v213_v38 }
  0xb0   : > { %v607_v44 = vsub.f32 %v184_v8, %v218_v41  ;;  %v226_v45 = vsub.f32 %v185_v12, %v218_v41  ;;  %v609_v46 = vsub.f32 %v182_v9, %v217_v42  ;;  %v225_v47 = vsub.f32 %v183_v13, %v217_v42 }
  0xb1   : > { %251 = vadd.xlane.f32.xlu1 %v250_v43 }
  0xb2   : > { %v230_v48 = vmul.f32 %v607_v44, %v607_v44  ;;  %v229_v49 = vmul.f32 %v609_v46, %v609_v46  ;;  %v246_v52 = vmul.f32 %v226_v45, %v226_v45  ;;  %v245_v53 = vmul.f32 %v225_v47, %v225_v47 }
  0xb4   : > { %v240_v50 = vsel %vm186_vm0, %v230_v48, 0.0  ;;  %v237_v51 = vsel %vm186_vm0, %v229_v49, 0.0  ;;  %v256_v54 = vsel %vm186_vm0, %v246_v52, 0.0  ;;  %v253_v55 = vsel %vm186_vm0, %v245_v53, 0.0 }
  0xb5   : > { %241 = vadd.xlane.f32.xlu1 %v240_v50  ;;  %238 = vadd.xlane.f32.xlu0 %v237_v51 }
  0xb9   : > { %257 = vadd.xlane.f32.xlu1 %v256_v54  ;;  %254 = vadd.xlane.f32.xlu0 %v253_v55 }
 0x136   : > { %v233_v60 = vpop.xlane.xlu0 %232 }
 0x13a   : > { %v236_v61 = vpop.xlane.xlu1 %235  ;;  %v249_v62 = vpop.xlane.xlu0 %248 }
 0x13b   : > { %v259_v63 = vadd.f32 %v249_v62, %v233_v60 }
 0x13d   : > { %v263_v0 = vmul.f32 0.0625, %v259_v63 }
 0x13e   : > { %v252_v1 = vpop.xlane.xlu1 %251 }
 0x13f   : > { %v267_v2 = vadd.f32 1e-05, %v263_v0  ;;  %v260_v3 = vadd.f32 %v252_v1, %v236_v61 }
 0x141   : > { %v264_v4 = vmul.f32 0.0625, %v260_v3  ;;  %529 = vrsqrt.f32 %v267_v2 }
 0x142   : > { %v242_v5 = vpop.xlane.xlu1 %241  ;;  %v239_v6 = vpop.xlane.xlu0 %238 }
 0x143   : > { %v268_v7 = vadd.f32 1e-05, %v264_v4 }
 0x145   : > { %531 = vrsqrt.f32 %v268_v7 }
 0x146   : > { %v258_v8 = vpop.xlane.xlu1 %257  ;;  %v255_v9 = vpop.xlane.xlu0 %254 }
 0x147   : > { %v262_v10 = vadd.f32 %v258_v8, %v242_v5  ;;  %v261_v11 = vadd.f32 %v255_v9, %v239_v6 }
 0x149   : > { %v266_v12 = vmul.f32 0.0625, %v262_v10  ;;  %v265_v13 = vmul.f32 0.0625, %v261_v11 }
 0x14b   : > { %v270_v14 = vadd.f32 1e-05, %v266_v12  ;;  %v269_v15 = vadd.f32 1e-05, %v265_v13  ;;  %v530_v16 = vpop.eup %529 }
 0x14c   : > { %v281_v18 = vmul.f32 %v530_v16, %v589_v23  ;;  %v275_v20 = vmul.f32 %v530_v16, %v587_v22 }
 0x14d   : > { %533 = vrsqrt.f32 %v270_v14 }
 0x14e   : > { %535 = vrsqrt.f32 %v269_v15 }
 0x14f   : > { %v532_v17 = vpop.eup %531 }
 0x150   : > { %v282_v19 = vmul.f32 %v532_v17, %v595_v30  ;;  %v276_v21 = vmul.f32 %v532_v17, %v593_v29 }
 0x152   : > { %v285_v24 = vpack.c.bf16 %v282_v19, %v281_v18  ;;  %v279_v25 = vpack.c.bf16 %v276_v21, %v275_v20 }
 0x154   : > { %505 = vmatprep.mubr.msk.bf16.mxu1 %vm186_vm0, %v285_v24  ;;  %511 = vmatprep.mubr.msk.bf16.mxu0 %vm186_vm0, %v279_v25 }
 0x157   : > { %v534_v26 = vpop.eup %533 }
 0x158   : > { %v536_v27 = vpop.eup %535  ;;  %v284_v28 = vmul.f32 %v534_v26, %v226_v45  ;;  %v278_v31 = vmul.f32 %v534_v26, %v607_v44 }
 0x159   : > { %v283_v32 = vmul.f32 %v536_v27, %v225_v47  ;;  %v277_v23 = vmul.f32 %v536_v27, %v609_v46 }
 0x15b   : > { %v286_v30 = vpack.c.bf16 %v284_v28, %v283_v32  ;;  %v280_v33 = vpack.c.bf16 %v278_v31, %v277_v23 }
 0x15d   : > { %506 = vmatmul.mubr.msk.bf16.vlgmr.msra.gmra.mrb[0].mxu1 %vm186_vm0, %v286_v30  ;;  %512 = vmatmul.mubr.msk.bf16.vlgmr.msra.gmra.mrb[0].mxu0 %vm186_vm0, %v280_v33 }
 0x230   : > { %v507_v22 = vpop.f32.mrb[0].mxu1  ;;  %v513_v29 = vpop.f32.mrb[0].mxu0 }
 0x231   : > { %v401_v35 = vadd.f32 %v513_v29, %v507_v22  ;;  %v334_v36 = vpop.f32.mrb[1].mxu1  ;;  %v392_v37 = vpop.f32.mrb[1].mxu0 }
 0x232   : > { %v393_v38 = vadd.f32 %v392_v37, %v334_v36  ;;  %v508_v39 = vpop.f32.mrb[2].mxu1  ;;  %v514_v40 = vpop.f32.mrb[2].mxu0 }
 0x233   : > { %v416_v41 = vadd.f32 %v493_v34, %v401_v35  ;;  %v404_v42 = vadd.f32 %v514_v40, %v508_v39  ;;  %v337_v43 = vpop.f32.mrb[3].mxu1  ;;  %v395_v44 = vpop.f32.mrb[3].mxu0 }
 0x234   : > { %v414_v45 = vadd.f32 %v493_v34, %v393_v38  ;;  %v396_v46 = vadd.f32 %v395_v44, %v337_v43 }
 0x235   : > { %420 = vst.msk [vmem:[%s175_s28 + $0x10] sm:$0xff] %vm186_vm0, %v416_v41  ;;  %v417_v47 = vadd.f32 %v493_v34, %v404_v42 }
 0x236   : > { %418 = vst.msk [vmem:[%s175_s28] sm:$0xff] %vm186_vm0, %v414_v45  ;;  %v415_v48 = vadd.f32 %v493_v34, %v396_v46 }
 0x237   : > { %421 = vst.msk [vmem:[%s175_s28 + $0x18] sm:$0xff] %vm186_vm0, %v417_v47 }
 0x238   : > { %419 = vst.msk [vmem:[%s175_s28 + $0x8] sm:$0xff] %vm186_vm0, %v415_v48 }
 0x239 PF: > { %s13_s12 = sadd.s32 1, %s543_s12  }
 0x23a   : > { %p10_p4 = scmp.ge.s32.totalorder %s13_s12, 6  }
 0x23c   :  { %12 = sbr.rel (!%p10_p4) target bundleno = 1 (0x1), region = 63 }

</bundles_post_ra>
